<compile_context>
chip_gen: v7x
topology: tpu7x:2x2x1
jax: 0.10.0
libtpu: 0.0.40
codegen_flags: <defaults>
</compile_context>

<pallas_src>
import jax
import jax.numpy as jnp
from jax.experimental import pallas as pl
from jax.experimental.pallas import tpu as pltpu


# ---------------------------------------------------------------------------
# Kernel
# ---------------------------------------------------------------------------
def basic_layer_kernel(x_ref, w13_ref, b1_ref, w2_ref, b23_ref, o_ref):
    # x_ref   : (d_in, tile)          one batch's slab of points (lanes = N)
    # w13_ref : (2*d_out, d_in)       concat of BN-folded conv1 & conv3 weights
    # b1_ref  : (d_out, 1)            BN1 bias
    # w2_ref  : (d_out, d_out)        BN-folded conv2 weight
    # b23_ref : (d_out, 1)            BN2 bias + BN3 bias (residual biases fused)
    # o_ref   : (d_out, tile)
    d_out = o_ref.shape[0]

    # One MXU pass over x serves both branches (mlp1 stage 1 and mlp2).
    z = jnp.dot(w13_ref[...], x_ref[...], preferred_element_type=jnp.float32)

    # mlp1 first stage: BN bias + ReLU (f32 epilogue).
    h = jnp.maximum(z[:d_out] + b1_ref[...], 0.0)

    # mlp1 second conv (cast back to weight dtype for the MXU if bf16 I/O).
    y1 = jnp.dot(w2_ref[...], h.astype(w2_ref.dtype),
                 preferred_element_type=jnp.float32)

    # residual add (mlp2 result is z[d_out:]) + fused biases + final ReLU.
    o_ref[...] = jnp.maximum(y1 + z[d_out:] + b23_ref[...], 0.0).astype(o_ref.dtype)


# ---------------------------------------------------------------------------
# Host-side parameter folding (eval-mode BN -> scale/bias, scale into weights)
# ---------------------------------------------------------------------------
def fold_bn(gamma, beta, mean, var, eps=1e-5):
    scale = gamma / jnp.sqrt(var + eps)
    bias = beta - mean * scale
    return scale, bias


def fold_params(w1, bn1, w2, bn2, w3, bn3):
    """w1,w3: (d_out,d_in) conv weights; w2: (d_out,d_out); bnX: (g,b,mean,var)."""
    s1, b1 = fold_bn(*bn1)
    s2, b2 = fold_bn(*bn2)
    s3, b3 = fold_bn(*bn3)
    w1e = w1 * s1[:, None]
    w2e = w2 * s2[:, None]
    w3e = w3 * s3[:, None]
    w13 = jnp.concatenate([w1e, w3e], axis=0)            # (2*d_out, d_in)
    return w13, b1.reshape(-1, 1), w2e, (b2 + b3).reshape(-1, 1)


# ---------------------------------------------------------------------------
# Tile sizing from a per-generation VMEM budget
# ---------------------------------------------------------------------------
def _round_up(x, m):
    return (x + m - 1) // m * m


def _pick_tile(N, d_in, d_out, x_bytes, out_bytes, vmem_limit, weight_bytes):
    # Per-lane VMEM bytes:
    #   double-buffered x block      : 2 * d_in  * x_bytes
    #   double-buffered output block : 2 * d_out * out_bytes
    #   z intermediate (2*d_out, t)  : 2 * d_out * 4   (f32)
    #   h / y1 temporaries           : 2 * d_out * 4   (f32)
    per_lane = (2 * d_in * x_bytes
                + 2 * d_out * out_bytes
                + 2 * d_out * 4
                + 2 * d_out * 4)
    # Weights are grid-invariant but still double-buffered by the pipeline;
    # budget them (x2) plus a small slack for semaphores / compiler scratch.
    budget = max(vmem_limit - 2 * weight_bytes - (2 << 20), 1 << 20)
    tile = (budget // per_lane) // 512 * 512
    tile = max(128, min(int(tile), _round_up(N, 128)))
    return tile


# ---------------------------------------------------------------------------
# Wrapper
# ---------------------------------------------------------------------------
def basic_layer(x_ncl, folded_params, *, io_dtype=None, out_dtype=None,
                tile_n=None):
    """x_ncl: (B, d_in, N) in PyTorch NCL layout -> (B, d_out, N)."""
    B, d_in, N = x_ncl.shape
    w13, b1, w2e, b23 = folded_params
    d_out = w2e.shape[0]
    out_dtype = jnp.dtype(out_dtype or jnp.float32)

    # Pad the channel dim to a multiple of 8 so z[:d_out] / z[d_out:] are
    # sublane-tile aligned views (no VMEM re-copy of z).  Padded channels are
    # all-zero so they stay zero through the whole pipeline and are sliced off.
    pad_c = (-d_out) % 8
    if pad_c:
        zc = ((0, pad_c), (0, 0))
        w1e, w3e = w13[:d_out], w13[d_out:]
        w13 = jnp.concatenate([jnp.pad(w1e, zc), jnp.pad(w3e, zc)], axis=0)
        w2e = jnp.pad(w2e, ((0, pad_c), (0, pad_c)))
        b1 = jnp.pad(b1, zc)
        b23 = jnp.pad(b23, zc)
    d_out_p = d_out + pad_c

    # Optional narrow matmul operands (helps every generation; kernel epilogue
    # stays f32 so this is v5e-safe).
    if io_dtype is not None:
        x_ncl = x_ncl.astype(io_dtype)
        w13 = w13.astype(io_dtype)
        w2e = w2e.astype(io_dtype)

    # Per-generation VMEM budget (v5e/v6e: 128 MiB phys -> ~96 MiB scoped;
    # v7x: 64 MiB phys -> ~48 MiB scoped).
    try:
        vmem_phys = int(pltpu.get_tpu_info().vmem_capacity_bytes)
    except Exception:
        vmem_phys = 64 * 1024 * 1024          # conservative fallback
    vmem_limit = vmem_phys * 3 // 4

    x_bytes = jnp.dtype(x_ncl.dtype).itemsize
    out_bytes = out_dtype.itemsize
    weight_bytes = int(w13.size * w13.dtype.itemsize
                       + w2e.size * w2e.dtype.itemsize
                       + b1.size * b1.dtype.itemsize
                       + b23.size * b23.dtype.itemsize)

    if tile_n is None:
        tile = _pick_tile(N, d_in, d_out_p, x_bytes, out_bytes,
                          vmem_limit, weight_bytes)
    else:
        tile = max(128, min(_round_up(tile_n, 128), _round_up(N, 128)))
    n_tiles = pl.cdiv(N, tile)   # ragged last block handled by Pallas masking

    const = lambda n, b: (0, 0)

    flops = 2 * B * N * (2 * d_out_p * d_in + d_out_p * d_out_p)
    bytes_accessed = (B * d_in * N * x_bytes
                      + weight_bytes
                      + B * d_out_p * N * out_bytes)

    y = pl.pallas_call(
        basic_layer_kernel,
        out_shape=jax.ShapeDtypeStruct((B, d_out_p, N), out_dtype),
        grid_spec=pltpu.PrefetchScalarGridSpec(
            num_scalar_prefetch=0,
            # N-tile axis leads so v7x's two TensorCores split tiles evenly
            # even when B is 1 or odd.
            grid=(n_tiles, B),
            in_specs=[
                pl.BlockSpec((None, d_in, tile), lambda n, b: (b, 0, n)),
                pl.BlockSpec((2 * d_out_p, d_in), const),
                pl.BlockSpec((d_out_p, 1), const),
                pl.BlockSpec((d_out_p, d_out_p), const),
                pl.BlockSpec((d_out_p, 1), const),
            ],
            out_specs=pl.BlockSpec((None, d_out_p, tile), lambda n, b: (b, 0, n)),
        ),
        compiler_params=pltpu.CompilerParams(
            dimension_semantics=("parallel", "parallel"),
            vmem_limit_bytes=int(vmem_limit),
        ),
        cost_estimate=pl.CostEstimate(flops=int(flops), transcendentals=0,
                                      bytes_accessed=int(bytes_accessed)),
    )(x_ncl, w13, b1, w2e, b23)

    return y[:, :d_out, :] if pad_c else y


# ---------------------------------------------------------------------------
# Raw (un-folded) parameters + pure-JAX reference of the PyTorch module
# ---------------------------------------------------------------------------
def make_raw_params(key, d_in, d_out):
    ks = jax.random.split(key, 6)
    w1 = jax.random.normal(ks[0], (d_out, d_in), jnp.float32) * 0.1
    w2 = jax.random.normal(ks[1], (d_out, d_out), jnp.float32) * 0.1
    w3 = jax.random.normal(ks[2], (d_out, d_in), jnp.float32) * 0.1

    def bn(k):
        k1, k2, k3, k4 = jax.random.split(k, 4)
        gamma = 1.0 + 0.1 * jax.random.normal(k1, (d_out,), jnp.float32)
        beta = 0.1 * jax.random.normal(k2, (d_out,), jnp.float32)
        mean = 0.1 * jax.random.normal(k3, (d_out,), jnp.float32)
        var = jnp.abs(jax.random.normal(k4, (d_out,), jnp.float32)) + 0.5
        return (gamma, beta, mean, var)

    return w1, bn(ks[3]), w2, bn(ks[4]), w3, bn(ks[5])


def reference(x_ncl, raw):
    w1, bn1, w2, bn2, w3, bn3 = raw

    def bn_apply(y, bn, eps=1e-5):
        g, b, m, v = bn
        return (y - m) / jnp.sqrt(v + eps) * g + b

    x = jnp.transpose(x_ncl, (0, 2, 1))                   # (B, N, d_in)
    h = jnp.maximum(bn_apply(x @ w1.T, bn1), 0.0)
    y1 = bn_apply(h @ w2.T, bn2)
    y2 = bn_apply(x @ w3.T, bn3)
    y = jnp.maximum(y1 + y2, 0.0)
    return jnp.transpose(y, (0, 2, 1))                    # (B, d_out, N)


# ---------------------------------------------------------------------------
if __name__ == "__main__":
    B, d_in, d_out, N = 2, 4, 32, 16
    key = jax.random.PRNGKey(0)
    kx, kp = jax.random.split(key)
    x = jax.random.normal(kx, (B, d_in, N), jnp.float32)

    raw = make_raw_params(kp, d_in, d_out)
    folded = fold_params(*raw)
    ref = reference(x, raw)

    # Default f32 path — strict check against the reference.
    out = jax.block_until_ready(basic_layer(x, folded))
    assert out.shape == (B, d_out, N)
    assert jnp.allclose(out, ref, atol=1e-4, rtol=1e-4), "mismatch vs reference"

    # Bandwidth path: bf16 operands + bf16 output, f32 epilogue; looser tol.
    out_bf16 = jax.block_until_ready(
        basic_layer(x, folded, io_dtype=jnp.bfloat16, out_dtype=jnp.bfloat16))
    assert out_bf16.shape == (B, d_out, N)
    assert jnp.allclose(out_bf16.astype(jnp.float32), ref, atol=5e-2, rtol=5e-2), \
        "bf16 path mismatch vs reference"

    print("KERNEL_OK")
</pallas_src>

<mosaic_0001>
module attributes {stable_mosaic.version = 11 : i64} {
  func.func @basic_layer_kernel(%arg0: i32, %arg1: i32, %arg2: memref<1x4x128xf32, #tpu.memory_space<vmem>>, %arg3: memref<64x4xf32, #tpu.memory_space<vmem>>, %arg4: memref<32x1xf32, #tpu.memory_space<vmem>>, %arg5: memref<32x32xf32, #tpu.memory_space<vmem>>, %arg6: memref<32x1xf32, #tpu.memory_space<vmem>>, %arg7: memref<1x32x128xf32, #tpu.memory_space<vmem>>) attributes {dimension_semantics = [#tpu.dimension_semantics<parallel>, #tpu.dimension_semantics<parallel>], iteration_bounds = array<i64: 1, 2>, scalar_prefetch = 0 : i64, scratch_operands = 0 : i64, tpu.core_type = #tpu.core_type<tc>, window_params = [{transform_indices = @transform_0, window_bounds = array<i64: 1, 4, 128>}, {pipeline_mode = #tpu.pipeline_mode<synchronous>, transform_indices = @transform_1, window_bounds = array<i64: 64, 4>}, {pipeline_mode = #tpu.pipeline_mode<synchronous>, transform_indices = @transform_2, window_bounds = array<i64: 32, 1>}, {pipeline_mode = #tpu.pipeline_mode<synchronous>, transform_indices = @transform_3, window_bounds = array<i64: 32, 32>}, {pipeline_mode = #tpu.pipeline_mode<synchronous>, transform_indices = @transform_4, window_bounds = array<i64: 32, 1>}, {transform_indices = @transform_5, window_bounds = array<i64: 1, 32, 128>}]} {
    %c0 = arith.constant 0 : index
    %c0_0 = arith.constant 0 : index
    %0 = vector.load %arg3[%c0, %c0_0] : memref<64x4xf32, #tpu.memory_space<vmem>>, vector<64x4xf32>
    %c0_1 = arith.constant 0 : index
    %c0_2 = arith.constant 0 : index
    %c0_3 = arith.constant 0 : index
    %1 = vector.load %arg2[%c0_1, %c0_2, %c0_3] : memref<1x4x128xf32, #tpu.memory_space<vmem>>, vector<1x4x128xf32>
    %2 = vector.shape_cast %1 : vector<1x4x128xf32> to vector<4x128xf32>
    %cst = arith.constant dense<0.000000e+00> : vector<64x128xf32>
    %3 = tpu.matmul %0, %2, %cst {dimension_numbers = #tpu.dot_dimension_numbers<[1], [0], [0], [1], [0, 0, 1, 1], [], []>} : vector<64x4xf32>, vector<4x128xf32>, vector<64x128xf32> -> vector<64x128xf32>
    %4 = vector.extract_strided_slice %3 {offsets = [0, 0], sizes = [32, 128], strides = [1, 1]} : vector<64x128xf32> to vector<32x128xf32>
    %c0_4 = arith.constant 0 : index
    %c0_5 = arith.constant 0 : index
    %5 = vector.load %arg4[%c0_4, %c0_5] : memref<32x1xf32, #tpu.memory_space<vmem>>, vector<32x1xf32>
    %6 = vector.broadcast %5 : vector<32x1xf32> to vector<32x128xf32>
    %7 = arith.addf %4, %6 : vector<32x128xf32>
    %cst_6 = arith.constant 0.000000e+00 : f32
    %8 = vector.broadcast %cst_6 : f32 to vector<32x128xf32>
    %9 = arith.maximumf %7, %8 : vector<32x128xf32>
    %c0_7 = arith.constant 0 : index
    %c0_8 = arith.constant 0 : index
    %10 = vector.load %arg5[%c0_7, %c0_8] : memref<32x32xf32, #tpu.memory_space<vmem>>, vector<32x32xf32>
    %cst_9 = arith.constant dense<0.000000e+00> : vector<32x128xf32>
    %11 = tpu.matmul %10, %9, %cst_9 {dimension_numbers = #tpu.dot_dimension_numbers<[1], [0], [0], [1], [0, 0, 1, 1], [], []>} : vector<32x32xf32>, vector<32x128xf32>, vector<32x128xf32> -> vector<32x128xf32>
    %12 = vector.extract_strided_slice %3 {offsets = [32, 0], sizes = [32, 128], strides = [1, 1]} : vector<64x128xf32> to vector<32x128xf32>
    %13 = arith.addf %11, %12 : vector<32x128xf32>
    %c0_10 = arith.constant 0 : index
    %c0_11 = arith.constant 0 : index
    %14 = vector.load %arg6[%c0_10, %c0_11] : memref<32x1xf32, #tpu.memory_space<vmem>>, vector<32x1xf32>
    %15 = vector.broadcast %14 : vector<32x1xf32> to vector<32x128xf32>
    %16 = arith.addf %13, %15 : vector<32x128xf32>
    %cst_12 = arith.constant 0.000000e+00 : f32
    %17 = vector.broadcast %cst_12 : f32 to vector<32x128xf32>
    %18 = arith.maximumf %16, %17 : vector<32x128xf32>
    %c0_13 = arith.constant 0 : index
    %c0_14 = arith.constant 0 : index
    %c0_15 = arith.constant 0 : index
    %19 = vector.load %arg7[%c0_13, %c0_14, %c0_15] : memref<1x32x128xf32, #tpu.memory_space<vmem>>, vector<1x32x128xf32>
    %20 = vector.shape_cast %19 : vector<1x32x128xf32> to vector<32x128xf32>
    %21 = vector.shape_cast %18 : vector<32x128xf32> to vector<1x32x128xf32>
    tpu.vector_store %arg7[%c0_13, %c0_14, %c0_15], %21 {strides = array<i32>} : memref<1x32x128xf32, #tpu.memory_space<vmem>>, vector<1x32x128xf32>,
    return
  }
  func.func @transform_0(%arg0: i32, %arg1: i32) -> (i32, i32, i32) {
    %c0_i32 = arith.constant 0 : i32
    %c0_i32_0 = arith.constant 0 : i32
    return %arg1, %c0_i32, %arg0 : i32, i32, i32
  }
  func.func @transform_1(%arg0: i32, %arg1: i32) -> (i32, i32) {
    %c0_i32 = arith.constant 0 : i32
    %c0_i32_0 = arith.constant 0 : i32
    %c0_i32_1 = arith.constant 0 : i32
    return %c0_i32, %c0_i32_0 : i32, i32
  }
  func.func @transform_2(%arg0: i32, %arg1: i32) -> (i32, i32) {
    %c0_i32 = arith.constant 0 : i32
    %c0_i32_0 = arith.constant 0 : i32
    %c0_i32_1 = arith.constant 0 : i32
    return %c0_i32, %c0_i32_0 : i32, i32
  }
  func.func @transform_3(%arg0: i32, %arg1: i32) -> (i32, i32) {
    %c0_i32 = arith.constant 0 : i32
    %c0_i32_0 = arith.constant 0 : i32
    %c0_i32_1 = arith.constant 0 : i32
    return %c0_i32, %c0_i32_0 : i32, i32
  }
  func.func @transform_4(%arg0: i32, %arg1: i32) -> (i32, i32) {
    %c0_i32 = arith.constant 0 : i32
    %c0_i32_0 = arith.constant 0 : i32
    %c0_i32_1 = arith.constant 0 : i32
    return %c0_i32, %c0_i32_0 : i32, i32
  }
  func.func @transform_5(%arg0: i32, %arg1: i32) -> (i32, i32, i32) {
    %c0_i32 = arith.constant 0 : i32
    %c0_i32_0 = arith.constant 0 : i32
    return %arg1, %c0_i32, %arg0 : i32, i32, i32
  }
}

</mosaic_0001>

<bundles_post_ra>
// kernel: tpu_custom_call.1
= control target key start
LH: loop header
LB: loop body
LE: loop exit
PB: predicated region body
PF: predicated region fallthrough
CT: control target
= control target key end

     0   :  { %s809_s18 = smov 0   ;;  %s811_s19 = smov 0   ;;  %s918_s0 = inlined_call_operand.vmem [shape: f32[2,4,16], index: 0, kind: input, shape index: {}]   ;;  %s919_s1 = inlined_call_operand.vmem [shape: f32[64,4], index: 1, kind: input, shape index: {}]   ;;  %s920_s2 = inlined_call_operand.vmem [shape: f32[32,1], index: 2, kind: input, shape index: {}]   ;;  %s921_s3 = inlined_call_operand.vmem [shape: f32[32,32], index: 3, kind: input, shape index: {}]   ;;  %s922_s4 = inlined_call_operand.vmem [shape: f32[32,1], index: 4, kind: input, shape index: {}]   ;;  %s923_s5 = inlined_call_operand.vmem [shape: f32[2,32,16], index: 5, kind: output, shape index: {}]  }
   0x1   :  { %s813_s20 = smov 0  }
   0x2 LB: > { %s24_s21 = sadd.s32 1, %s772_s19  ;;  %p650_p0 = scmp.ge.s32.totalorder %s776_s20, 1  ;;  %s776_s20 = sphi %s813_s20, %s15_s20   ;;  %s772_s19 = sphi %s811_s19, %s925_s19   ;;  %s768_s18 = sphi %s809_s18, %s924_s18  }
   0x3   : > { %p25_p1 = scmp.ge.s32.totalorder %s24_s21, 2  ;;  %p205_p2 = scmp.lt.s32.totalorder %s776_s20, 3 }
   0x5   : > { %s927_s21 = smov (%p25_p1, %s24_s21), 0  ;;  %p206_p3 = pnand %p650_p0, %p205_p2 }
   0x6   : > { %p238_p4 = scmp.lt.s32.totalorder (!%p206_p3), %s768_s18, 1  ;;  %v253_v0 = vld [vmem:[%s919_s1] sm:$0xff] (!%p206_p3)  ;;  %vm262_vm0 = vcmask (!%p206_p3), 31744   ;;  %v398_v2 = vld [vmem:[%s920_s2 + $0x10] sm:$0xff] (!%p206_p3)  ;;  %v778_v3 = vmov (!%p206_p3), 0   ;;  %vm287_vm1 = vcmask (!%p206_p3), 1043456  }
   0x7   : > { %209 = sbr.rel (%p206_p3) target bundleno = 471 (0x1d7), region = 40  ;;  %689 = vmatprep.mubr.msk.f32.mxu1 (!%p206_p3), %vm262_vm0, %v253_v0  ;;  %v396_v1 = vld [vmem:[%s920_s2] sm:$0xff] (!%p206_p3)  ;;  %752 = vset.pattern.permute.xlu0 (!%p206_p3), %v778_v3  ;;  %v397_v4 = vld [vmem:[%s920_s2 + $0x8] sm:$0xff] (!%p206_p3)  ;;  %v399_v5 = vld [vmem:[%s920_s2 + $0x18] sm:$0xff] (!%p206_p3)  ;;  %vm432_vm2 = vcmask (!%p206_p3), 261120  }
   0x8   : > { %753 = vset.pattern.permute.xlu1 (!%p206_p3), %v778_v3  ;;  %402 = vperm.xlu0 (!%p206_p3), %752, %v396_v1   ;;  %v254_v7 = vld [vmem:[%s919_s1 + $0x8] sm:$0xff] (!%p206_p3)  ;;  %v255_v8 = vld [vmem:[%s919_s1 + $0x10] sm:$0xff] (!%p206_p3)  ;;  %v530_v9 = vld [vmem:[%s922_s4] sm:$0xff] (!%p206_p3) }
   0x9   : > { %412 = vperm.xlu1 (!%p206_p3), %753, %v398_v2   ;;  %v531_v10 = vld [vmem:[%s922_s4 + $0x8] sm:$0xff] (!%p206_p3)  ;;  %v256_v11 = vld [vmem:[%s919_s1 + $0x18] sm:$0xff] (!%p206_p3)  ;;  %v532_v12 = vld [vmem:[%s922_s4 + $0x10] sm:$0xff] (!%p206_p3) }
   0xa   : > { %v533_v13 = vld [vmem:[%s922_s4 + $0x18] sm:$0xff] (!%p206_p3)  ;;  %v257_v14 = vld [vmem:[%s919_s1 + $0x20] sm:$0xff] (!%p206_p3)  ;;  %v258_v15 = vld [vmem:[%s919_s1 + $0x28] sm:$0xff] (!%p206_p3) }
   0xb   : > { %v428_v16 = vld [vmem:[%s921_s3] sm:$0xff] (!%p206_p3)  ;;  %v259_v17 = vld [vmem:[%s919_s1 + $0x30] sm:$0xff] (!%p206_p3)  ;;  %v260_v18 = vld [vmem:[%s919_s1 + $0x38] sm:$0xff] (!%p206_p3) }
   0xc   : > { %407 = vperm.xlu0 (!%p206_p3), %752, %v397_v4   ;;  %709 = vmatprep.mubr.msk.f32.mxu0 (!%p206_p3), %vm432_vm2, %v428_v16  ;;  %v429_v37 = vld [vmem:[%s921_s3 + $0x8] sm:$0xff] (!%p206_p3)  ;;  %v430_v38 = vld [vmem:[%s921_s3 + $0x10] sm:$0xff] (!%p206_p3)  ;;  %v431_v39 = vld [vmem:[%s921_s3 + $0x18] sm:$0xff] (!%p206_p3) }
   0xd   : > { %417 = vperm.xlu1 (!%p206_p3), %753, %v399_v5  }
   0xe   : > { %s929_s18 = smov (!%p238_p4, %s768_s18), 1 }
   0xf   : > { %s651_s28 = sshll.u32 %s929_s18, 2  ;;  %s669_s24 = sshll.u32 %s929_s18, 5 }
  0x10   : > { %s244_s8 = scalar_lea.vmem %s918_s0, %s651_s28  ;;  %536 = vperm.xlu0 %752, %v530_v9   ;;  %s252_s27 = scalar_lea.vmem %s923_s5, %s669_s24 }
  0x11   : > { %v261_v6 = vld [vmem:[%s244_s8] sm:$0xf]  ;;  %541 = vperm.xlu1 %753, %v531_v10  }
  0x12   : > { %687 = vmatprep.subr.msk.mxu1 %vm287_vm1, %v261_v6 }
  0x13   : > { %688 = vmatpush3.msk.msra.mxu1 %vm287_vm1, %v261_v6 }
  0x14   : > { %690 = vmatmul.mubr.msk.f32.vlgmr.msra.gmra.mrb[0].mxu1 %vm262_vm0, %v254_v7  ;;  %546 = vperm.xlu0 %752, %v532_v12  }
  0x15   : > { %692 = vmatprep.mubr.msk.f32.mxu1 %vm262_vm0, %v255_v8  ;;  %551 = vperm.xlu1 %753, %v533_v13  }
  0x18   : > { %693 = vmatmul.mubr.msk.f32.gmra.mrb[2].mxu1 %vm262_vm0, %v256_v11 }
  0x19   : > { %695 = vmatprep.mubr.msk.f32.mxu1 %vm262_vm0, %v257_v14 }
  0x1c   : > { %696 = vmatmul.mubr.msk.f32.gmra.mrb[4].mxu1 %vm262_vm0, %v258_v15 }
  0x1d   : > { %698 = vmatprep.mubr.msk.f32.mxu1 %vm262_vm0, %v259_v17 }
  0x20   : > { %699 = vmatmul.mubr.msk.f32.gmra.mrb[6].mxu1 %vm262_vm0, %v260_v18 }
  0x87   : > { %v403_v19 = vpop.permute.xlu0 %402 }
  0x88   : > { %v413_v20 = vpop.permute.xlu1 %412 }
  0x8b   : > { %v408_v21 = vpop.permute.xlu0 %407 }
  0x8c   : > { %v418_v27 = vpop.permute.xlu1 %417 }
  0x8f   : > { %v537_v46 = vpop.permute.xlu0 %536 }
  0x90   : > { %v542_v44 = vpop.permute.xlu1 %541 }
  0x93   : > { %v547_v59 = vpop.permute.xlu0 %546 }
  0x94   : > { %v552_v56 = vpop.permute.xlu1 %551 }
  0xe7   : > { %v691_v22 = vpop.f32.mrb[0].mxu1 }
  0xe8   : > { %v421_v23 = vadd.f32 %v691_v22, %v408_v21  ;;  %v357_v24 = vpop.f32.mrb[1].mxu1 }
  0xe9   : > { %v420_v25 = vadd.f32 %v403_v19, %v357_v24 }
  0xea   : > { %v425_v26 = vmax.f32 %v421_v23, 0.0 }
  0xeb   : > { %v424_v28 = vmax.f32 %v420_v25, 0.0  ;;  %v694_v29 = vpop.f32.mrb[2].mxu1 }
  0xec   : > { %v423_v30 = vadd.f32 %v694_v29, %v418_v27  ;;  %v367_v31 = vpop.f32.mrb[3].mxu1 }
  0xed   : > { %v422_v32 = vadd.f32 %v413_v20, %v367_v31  ;;  %v715_v33 = vpack.c.bf16 %v425_v26, %v424_v28 }
  0xee   : > { %v427_v34 = vmax.f32 %v423_v30, 0.0 }
  0xef   : > { %v426_v35 = vmax.f32 %v422_v32, 0.0  ;;  %716 = vmatprep.subr.bf16.mxu0 %v715_v33  ;;  %v697_v40 = vpop.f32.mrb[4].mxu1 }
  0xf0   : > { %718 = vmatpush3.bf16.msra.mxu0 %v715_v33  ;;  %v377_v41 = vpop.f32.mrb[5].mxu1 }
  0xf1   : > { %v719_v36 = vpack.c.bf16 %v427_v34, %v426_v35 }
  0xf3   : > { %720 = vmatprep.subr.bf16.mxu0 %v719_v36  ;;  %v700_v42 = vpop.f32.mrb[6].mxu1 }
  0xf4   : > { %722 = vmatpush3.bf16.msra.mxu0 %v719_v36  ;;  %v387_v43 = vpop.f32.mrb[7].mxu1 }
  0xf7   : > { %710 = vmatmul.mubr.msk.f32.vlgmr.msra.gmra.mrb[0].mxu0 %vm432_vm2, %v429_v37 }
  0xf8   : > { %712 = vmatprep.mubr.msk.f32.mxu0 %vm432_vm2, %v430_v38 }
  0xfb   : > { %713 = vmatmul.mubr.msk.f32.gmra.mrb[2].mxu0 %vm432_vm2, %v431_v39 }
 0x1ca   : > { %v711_v45 = vpop.f32.mrb[0].mxu0 }
 0x1cb   : > { %v517_v47 = vadd.f32 %v711_v45, %v697_v40  ;;  %v511_v48 = vpop.f32.mrb[1].mxu0 }
 0x1cc   : > { %v512_v49 = vadd.f32 %v511_v48, %v377_v41 }
 0x1cd   : > { %v555_v50 = vadd.f32 %v542_v44, %v517_v47 }
 0x1ce   : > { %v554_v51 = vadd.f32 %v537_v46, %v512_v49  ;;  %v714_v52 = vpop.f32.mrb[2].mxu0 }
 0x1cf   : > { %v559_v53 = vmax.f32 %v555_v50, 0.0  ;;  %v527_v54 = vadd.f32 %v714_v52, %v700_v42  ;;  %v521_v55 = vpop.f32.mrb[3].mxu0 }
 0x1d0   : > { %v558_v57 = vmax.f32 %v554_v51, 0.0  ;;  %v522_v58 = vadd.f32 %v521_v55, %v387_v43 }
 0x1d1   : > { %563 = vst [vmem:[%s252_s27 + $0x8] sm:$0xff] %v559_v53  ;;  %v557_v60 = vadd.f32 %v552_v56, %v527_v54 }
 0x1d2   : > { %562 = vst [vmem:[%s252_s27] sm:$0xff] %v558_v57  ;;  %v556_v61 = vadd.f32 %v547_v59, %v522_v58 }
 0x1d3   : > { %v561_v62 = vmax.f32 %v557_v60, 0.0 }
 0x1d4   : > { %v560_v63 = vmax.f32 %v556_v61, 0.0 }
 0x1d5   : > { %565 = vst [vmem:[%s252_s27 + $0x18] sm:$0xff] %v561_v62 }
 0x1d6   : > { %564 = vst [vmem:[%s252_s27 + $0x10] sm:$0xff] %v560_v63 }
 0x1d7 PF: > { %s15_s20 = sadd.s32 1, %s776_s20   ;;  %s924_s18 = smov %s772_s19 }
 0x1d8   : > { %p12_p5 = scmp.ge.s32.totalorder %s15_s20, 4   ;;  %s925_s19 = smov %s927_s21 }
 0x1da   :  { %14 = sbr.rel (!%p12_p5) target bundleno = 2 (0x2), region = 70 }

</bundles_post_ra>
